<compile_context>
chip_gen: v7x
topology: tpu7x:2x2x1
jax: 0.10.0
libtpu: 0.0.40
codegen_flags: <defaults>
</compile_context>

<pallas_src>
import functools
import math

import jax
import jax.numpy as jnp
from jax.experimental import pallas as pl
from jax.experimental.pallas import tpu as pltpu


# --------------------------------- fused per-(batch, layer) kernel ---------------------------------
# PyTorch TransformerEncoderLayer (norm_first=False, activation=relu, eps=1e-5):
#   h = LayerNorm1(x + SelfAttn(x)) ;  y = LayerNorm2(h + Linear2(ReLU(Linear1(h))))
# nhead=1 -> single-head scaled dot-product attention over the L axis per batch element.
#
# Packed vector rows (vec_ref[0] is (10, D)):
#   0: bq  1: bk  2: bv  3: bo  4: ln1_g  5: ln1_b  6: b1  7: b2  8: ln2_g  9: ln2_b
# Packed weight slabs (w_ref[0] is (6, D, D), all (in, out)):  [wq, wk, wv, w_out, w1, w2]
# (dim_feedforward == d_model in this module, so every matrix is D x D.)

def _trans_encoder_kernel(x_ref, cw_ref, cb_ref, w_ref, vec_ref, o_ref, h_ref,
                          *, scale, eps):
    li = pl.program_id(1)  # layer index (inner, "arbitrary" axis)

    # ---- layer 0: Conv1d(kernel_size=1) == pointwise linear over channels ----
    @pl.when(li == 0)
    def _():
        h_ref[...] = (
            jnp.dot(x_ref[0].astype(jnp.bfloat16), cw_ref[...],
                    preferred_element_type=jnp.float32)
            + cb_ref[...]
        )  # (L, D) f32

    vec = vec_ref[0]                       # (10, D) f32
    h = h_ref[...]                         # (L, D)  f32  (carried across layers)
    hb = h.astype(jnp.bfloat16)

    # ---- single-head self attention: three D->D matmuls (no lane-offset slicing) ----
    q = jnp.dot(hb, w_ref[0, 0], preferred_element_type=jnp.float32) + vec[0:1]
    k = jnp.dot(hb, w_ref[0, 1], preferred_element_type=jnp.float32) + vec[1:2]
    v = jnp.dot(hb, w_ref[0, 2], preferred_element_type=jnp.float32) + vec[2:3]

    # scores: contract the feature axis directly (NT matmul, no explicit k.T)
    s = jax.lax.dot_general(
        (q * scale).astype(jnp.bfloat16), k.astype(jnp.bfloat16),
        (((1,), (1,)), ((), ())), preferred_element_type=jnp.float32)   # (L, L) f32
    m = jnp.max(s, axis=-1, keepdims=True)
    p = jnp.exp(s - m)
    p = p / jnp.sum(p, axis=-1, keepdims=True)   # exact softmax (torch parity)
    attn = jnp.dot(p.astype(jnp.bfloat16), v.astype(jnp.bfloat16),
                   preferred_element_type=jnp.float32)                   # (L, D)
    attn = (jnp.dot(attn.astype(jnp.bfloat16), w_ref[0, 3],
                    preferred_element_type=jnp.float32) + vec[3:4])

    # ---- residual + LayerNorm1 (post-norm), f32 ----
    h = h + attn
    mu = jnp.mean(h, axis=-1, keepdims=True)
    var = jnp.mean((h - mu) ** 2, axis=-1, keepdims=True)
    h = (h - mu) * jax.lax.rsqrt(var + eps) * vec[4:5] + vec[5:6]

    # ---- feed forward (ReLU) ----
    f = jnp.dot(h.astype(jnp.bfloat16), w_ref[0, 4],
                preferred_element_type=jnp.float32) + vec[6:7]
    f = jnp.maximum(f, 0.0)
    f = jnp.dot(f.astype(jnp.bfloat16), w_ref[0, 5],
                preferred_element_type=jnp.float32) + vec[7:8]

    # ---- residual + LayerNorm2 ----
    h = h + f
    mu = jnp.mean(h, axis=-1, keepdims=True)
    var = jnp.mean((h - mu) ** 2, axis=-1, keepdims=True)
    h = (h - mu) * jax.lax.rsqrt(var + eps) * vec[8:9] + vec[9:10]

    h_ref[...] = h                                   # carry to next layer

    @pl.when(li == pl.num_programs(1) - 1)
    def _():
        o_ref[0] = h.astype(o_ref.dtype)             # flush once per batch element


# --------------------------------------- parameters ---------------------------------------

def init_params(key, inc, d_model, nlayer):
    """Parameters in the packed layout the kernel consumes.

    PyTorch Linear weights are (out, in); the kernel consumes (in, out).  MXU operands
    (matrices) are stored bf16; biases / LayerNorm vectors stay f32.
    """
    D = d_model
    keys = jax.random.split(key, 1 + nlayer)

    kc1, kc2 = jax.random.split(keys[0])
    conv_w = (jax.random.normal(kc1, (D, inc)) * 0.05).astype(jnp.float32)  # torch (out, in, 1)
    conv_b = (jax.random.normal(kc2, (D,)) * 0.05).astype(jnp.float32)

    wmats, vecs = [], []
    for i in range(nlayer):
        ks = jax.random.split(keys[1 + i], 8)
        w_in = (jax.random.normal(ks[0], (3 * D, D)) * 0.05).astype(jnp.float32)   # in_proj_weight
        b_in = (jax.random.normal(ks[1], (3 * D,)) * 0.05).astype(jnp.float32)
        w_out = (jax.random.normal(ks[2], (D, D)) * 0.05).astype(jnp.float32)      # out_proj
        b_out = (jax.random.normal(ks[3], (D,)) * 0.05).astype(jnp.float32)
        w1 = (jax.random.normal(ks[4], (D, D)) * 0.05).astype(jnp.float32)         # linear1 (Dff == D)
        b1 = (jax.random.normal(ks[5], (D,)) * 0.05).astype(jnp.float32)
        w2 = (jax.random.normal(ks[6], (D, D)) * 0.05).astype(jnp.float32)         # linear2
        b2 = (jax.random.normal(ks[7], (D,)) * 0.05).astype(jnp.float32)

        wmats.append(jnp.stack([
            w_in[0 * D:1 * D].T, w_in[1 * D:2 * D].T, w_in[2 * D:3 * D].T,  # wq, wk, wv
            w_out.T, w1.T, w2.T,
        ], axis=0))                                                          # (6, D, D)
        vecs.append(jnp.stack([
            b_in[:D], b_in[D:2 * D], b_in[2 * D:], b_out,                    # bq, bk, bv, bo
            jnp.ones((D,), jnp.float32), jnp.zeros((D,), jnp.float32),       # ln1 gamma, beta
            b1, b2,                                                          # FFN biases
            jnp.ones((D,), jnp.float32), jnp.zeros((D,), jnp.float32),       # ln2 gamma, beta
        ], axis=0))                                                          # (10, D)

    return {
        "conv_w": conv_w.T.astype(jnp.bfloat16),          # (inc, D)        bf16
        "conv_b": conv_b.reshape(1, D),                   # (1, D)          f32
        "wmat": jnp.stack(wmats).astype(jnp.bfloat16),    # (nlayer, 6, D, D) bf16
        "vecs": jnp.stack(vecs),                          # (nlayer, 10, D)   f32
    }


# ----------------------------------------- forward -----------------------------------------

def trans_encoder_forward(params, x):
    """x: (N, C_in, L) f32 (PyTorch Conv1d NCL layout). Returns (L, N, d_model) f32."""
    N, C, L = x.shape
    D = params["conv_b"].shape[-1]
    nlayer = params["wmat"].shape[0]

    # Tokens L-major so the in-kernel conv is a plain NN matmul per batch element.
    x_tok = jnp.transpose(x, (0, 2, 1))                   # (N, L, C)

    kern = functools.partial(
        _trans_encoder_kernel,
        scale=1.0 / math.sqrt(D),     # nhead=1 -> head_dim == d_model
        eps=1e-5,
    )

    grid_spec = pltpu.PrefetchScalarGridSpec(
        num_scalar_prefetch=0,
        grid=(N, nlayer),             # batch (parallel, outer) x layer (arbitrary, inner)
        in_specs=[
            # x / conv params: constant index over the layer axis -> DMA'd once per batch.
            pl.BlockSpec((1, L, C), lambda b, li: (b, 0, 0)),
            pl.BlockSpec((C, D), lambda b, li: (0, 0)),
            pl.BlockSpec((1, D), lambda b, li: (0, 0)),
            # Per-layer weights / vectors: streamed + double-buffered by the pipeline.
            pl.BlockSpec((1, 6, D, D), lambda b, li: (li, 0, 0, 0)),
            pl.BlockSpec((1, 10, D), lambda b, li: (li, 0, 0)),
        ],
        out_specs=pl.BlockSpec((1, L, D), lambda b, li: (b, 0, 0)),
        scratch_shapes=[pltpu.VMEM((L, D), jnp.float32)],   # layer-to-layer activation carry
    )

    out = pl.pallas_call(
        kern,
        out_shape=jax.ShapeDtypeStruct((N, L, D), jnp.float32),
        grid_spec=grid_spec,
        compiler_params=pltpu.CompilerParams(
            dimension_semantics=("parallel", "arbitrary"),
            vmem_limit_bytes=48 * 1024 * 1024,   # headroom under v7x's 64 MiB physical VMEM
        ),
    )(x_tok, params["conv_w"], params["conv_b"], params["wmat"], params["vecs"])

    # torch: conv_out.permute(2, 0, 1) -> (L, N, D); TransformerEncoder keeps that layout.
    return jnp.transpose(out, (1, 0, 2))


# ----------------------------------- pure-JAX reference ------------------------------------

def _reference_forward(params, x, eps=1e-5):
    """Plain-jnp mirror of the kernel numerics (bf16 MXU operands, f32 accumulation)."""
    N, C, L = x.shape
    D = params["conv_b"].shape[-1]
    nlayer = params["wmat"].shape[0]
    scale = 1.0 / math.sqrt(D)

    x_tok = jnp.transpose(x, (0, 2, 1)).astype(jnp.bfloat16)           # (N, L, C)
    h = jnp.einsum("nlc,cd->nld", x_tok, params["conv_w"],
                   preferred_element_type=jnp.float32) + params["conv_b"]

    for li in range(nlayer):
        w = params["wmat"][li]
        vec = params["vecs"][li]
        hb = h.astype(jnp.bfloat16)
        q = jnp.einsum("nld,de->nle", hb, w[0], preferred_element_type=jnp.float32) + vec[0]
        k = jnp.einsum("nld,de->nle", hb, w[1], preferred_element_type=jnp.float32) + vec[1]
        v = jnp.einsum("nld,de->nle", hb, w[2], preferred_element_type=jnp.float32) + vec[2]
        s = jnp.einsum("nqd,nkd->nqk", (q * scale).astype(jnp.bfloat16),
                       k.astype(jnp.bfloat16), preferred_element_type=jnp.float32)
        s = s - jnp.max(s, axis=-1, keepdims=True)
        p = jnp.exp(s)
        p = p / jnp.sum(p, axis=-1, keepdims=True)
        attn = jnp.einsum("nqk,nkd->nqd", p.astype(jnp.bfloat16), v.astype(jnp.bfloat16),
                          preferred_element_type=jnp.float32)
        attn = jnp.einsum("nld,de->nle", attn.astype(jnp.bfloat16), w[3],
                          preferred_element_type=jnp.float32) + vec[3]
        h = h + attn
        mu = jnp.mean(h, axis=-1, keepdims=True)
        var = jnp.mean((h - mu) ** 2, axis=-1, keepdims=True)
        h = (h - mu) * jax.lax.rsqrt(var + eps) * vec[4] + vec[5]
        f = jnp.einsum("nld,df->nlf", h.astype(jnp.bfloat16), w[4],
                       preferred_element_type=jnp.float32) + vec[6]
        f = jnp.maximum(f, 0.0)
        f = jnp.einsum("nlf,fd->nld", f.astype(jnp.bfloat16), w[5],
                       preferred_element_type=jnp.float32) + vec[7]
        h = h + f
        mu = jnp.mean(h, axis=-1, keepdims=True)
        var = jnp.mean((h - mu) ** 2, axis=-1, keepdims=True)
        h = (h - mu) * jax.lax.rsqrt(var + eps) * vec[8] + vec[9]

    return jnp.transpose(h, (1, 0, 2))                                  # (L, N, D)


if __name__ == "__main__":
    # Small shapes consistent with the module: batch=2, inc=8, d_model=dim_ff=32, seq=8.
    N, INC, D_MODEL, L, NLAYER = 2, 8, 32, 8, 2

    key = jax.random.PRNGKey(0)
    kx, kp = jax.random.split(key)
    x = jax.random.normal(kx, (N, INC, L), dtype=jnp.float32)    # PyTorch NCL conv input
    params = init_params(kp, INC, D_MODEL, NLAYER)

    fwd = jax.jit(trans_encoder_forward)
    out = jax.block_until_ready(fwd(params, x))

    assert out.shape == (L, N, D_MODEL), out.shape
    assert bool(jnp.all(jnp.isfinite(out)))

    ref = _reference_forward(params, x)
    max_err = float(jnp.max(jnp.abs(out - ref)))
    assert bool(jnp.allclose(out, ref, atol=2e-2, rtol=2e-2)), max_err

    print("KERNEL_OK")
</pallas_src>

<mosaic_0001>
module attributes {stable_mosaic.version = 11 : i64} {
  func.func @_trans_encoder_kernel(%arg0: i32, %arg1: i32, %arg2: memref<1x8x8xf32, #tpu.memory_space<vmem>>, %arg3: memref<8x32xbf16, #tpu.memory_space<vmem>>, %arg4: memref<1x32xf32, #tpu.memory_space<vmem>>, %arg5: memref<1x6x32x32xbf16, #tpu.memory_space<vmem>>, %arg6: memref<1x10x32xf32, #tpu.memory_space<vmem>>, %arg7: memref<1x8x32xf32, #tpu.memory_space<vmem>>, %arg8: memref<8x32xf32, #tpu.memory_space<vmem>>) attributes {dimension_semantics = [#tpu.dimension_semantics<parallel>, #tpu.dimension_semantics<arbitrary>], iteration_bounds = array<i64: 2, 2>, scalar_prefetch = 0 : i64, scratch_operands = 1 : i64, tpu.core_type = #tpu.core_type<tc>, window_params = [{transform_indices = @transform_0, window_bounds = array<i64: 1, 8, 8>}, {pipeline_mode = #tpu.pipeline_mode<synchronous>, transform_indices = @transform_1, window_bounds = array<i64: 8, 32>}, {pipeline_mode = #tpu.pipeline_mode<synchronous>, transform_indices = @transform_2, window_bounds = array<i64: 1, 32>}, {transform_indices = @transform_3, window_bounds = array<i64: 1, 6, 32, 32>}, {transform_indices = @transform_4, window_bounds = array<i64: 1, 10, 32>}, {transform_indices = @transform_5, window_bounds = array<i64: 1, 8, 32>}]} {
    %c0_i32 = arith.constant 0 : i32
    %0 = arith.cmpi eq, %arg1, %c0_i32 : i32
    %1 = arith.extui %0 : i1 to i32
    %c0_i32_0 = arith.constant 0 : i32
    %2 = arith.cmpi ne, %1, %c0_i32_0 : i32
    scf.if %2 {
      %c0_48 = arith.constant 0 : index
      %c0_49 = arith.constant 0 : index
      %c0_50 = arith.constant 0 : index
      %119 = vector.load %arg2[%c0_48, %c0_49, %c0_50] : memref<1x8x8xf32, #tpu.memory_space<vmem>>, vector<1x8x8xf32>
      %120 = vector.shape_cast %119 : vector<1x8x8xf32> to vector<8x8xf32>
      %121 = arith.truncf %120 : vector<8x8xf32> to vector<8x8xbf16>
      %c0_51 = arith.constant 0 : index
      %c0_52 = arith.constant 0 : index
      %122 = vector.load %arg3[%c0_51, %c0_52] : memref<8x32xbf16, #tpu.memory_space<vmem>>, vector<8x32xbf16>
      %cst_53 = arith.constant dense<0.000000e+00> : vector<8x32xf32>
      %123 = tpu.matmul %121, %122, %cst_53 {dimension_numbers = #tpu.dot_dimension_numbers<[1], [0], [0], [1], [0, 0, 1, 1], [], []>} : vector<8x8xbf16>, vector<8x32xbf16>, vector<8x32xf32> -> vector<8x32xf32>
      %c0_54 = arith.constant 0 : index
      %c0_55 = arith.constant 0 : index
      %124 = vector.load %arg4[%c0_54, %c0_55] : memref<1x32xf32, #tpu.memory_space<vmem>>, vector<1x32xf32>
      %125 = vector.broadcast %124 : vector<1x32xf32> to vector<8x32xf32>
      %126 = arith.addf %123, %125 : vector<8x32xf32>
      %c0_56 = arith.constant 0 : index
      %c0_57 = arith.constant 0 : index
      %127 = vector.load %arg8[%c0_56, %c0_57] : memref<8x32xf32, #tpu.memory_space<vmem>>, vector<8x32xf32>
      tpu.vector_store %arg8[%c0_56, %c0_57], %126 {strides = array<i32>} : memref<8x32xf32, #tpu.memory_space<vmem>>, vector<8x32xf32>,
    } else {
    }
    %c0 = arith.constant 0 : index
    %c0_1 = arith.constant 0 : index
    %c0_2 = arith.constant 0 : index
    %3 = vector.load %arg6[%c0, %c0_1, %c0_2] : memref<1x10x32xf32, #tpu.memory_space<vmem>>, vector<1x10x32xf32>
    %4 = vector.shape_cast %3 : vector<1x10x32xf32> to vector<10x32xf32>
    %c0_3 = arith.constant 0 : index
    %c0_4 = arith.constant 0 : index
    %5 = vector.load %arg8[%c0_3, %c0_4] : memref<8x32xf32, #tpu.memory_space<vmem>>, vector<8x32xf32>
    %6 = arith.truncf %5 : vector<8x32xf32> to vector<8x32xbf16>
    %c0_5 = arith.constant 0 : index
    %c0_6 = arith.constant 0 : index
    %c0_7 = arith.constant 0 : index
    %c0_8 = arith.constant 0 : index
    %7 = vector.load %arg5[%c0_5, %c0_6, %c0_7, %c0_8] : memref<1x6x32x32xbf16, #tpu.memory_space<vmem>>, vector<1x1x32x32xbf16>
    %8 = vector.shape_cast %7 : vector<1x1x32x32xbf16> to vector<32x32xbf16>
    %cst = arith.constant dense<0.000000e+00> : vector<8x32xf32>
    %9 = tpu.matmul %6, %8, %cst {dimension_numbers = #tpu.dot_dimension_numbers<[1], [0], [0], [1], [0, 0, 1, 1], [], []>} : vector<8x32xbf16>, vector<32x32xbf16>, vector<8x32xf32> -> vector<8x32xf32>
    %10 = vector.extract_strided_slice %4 {offsets = [0, 0], sizes = [1, 32], strides = [1, 1]} : vector<10x32xf32> to vector<1x32xf32>
    %11 = vector.broadcast %10 : vector<1x32xf32> to vector<8x32xf32>
    %12 = arith.addf %9, %11 : vector<8x32xf32>
    %c0_9 = arith.constant 0 : index
    %c1 = arith.constant 1 : index
    %c0_10 = arith.constant 0 : index
    %c0_11 = arith.constant 0 : index
    %13 = vector.load %arg5[%c0_9, %c1, %c0_10, %c0_11] : memref<1x6x32x32xbf16, #tpu.memory_space<vmem>>, vector<1x1x32x32xbf16>
    %14 = vector.shape_cast %13 : vector<1x1x32x32xbf16> to vector<32x32xbf16>
    %cst_12 = arith.constant dense<0.000000e+00> : vector<8x32xf32>
    %15 = tpu.matmul %6, %14, %cst_12 {dimension_numbers = #tpu.dot_dimension_numbers<[1], [0], [0], [1], [0, 0, 1, 1], [], []>} : vector<8x32xbf16>, vector<32x32xbf16>, vector<8x32xf32> -> vector<8x32xf32>
    %16 = vector.extract_strided_slice %4 {offsets = [1, 0], sizes = [1, 32], strides = [1, 1]} : vector<10x32xf32> to vector<1x32xf32>
    %17 = vector.broadcast %16 : vector<1x32xf32> to vector<8x32xf32>
    %18 = arith.addf %15, %17 : vector<8x32xf32>
    %c0_13 = arith.constant 0 : index
    %c2 = arith.constant 2 : index
    %c0_14 = arith.constant 0 : index
    %c0_15 = arith.constant 0 : index
    %19 = vector.load %arg5[%c0_13, %c2, %c0_14, %c0_15] : memref<1x6x32x32xbf16, #tpu.memory_space<vmem>>, vector<1x1x32x32xbf16>
    %20 = vector.shape_cast %19 : vector<1x1x32x32xbf16> to vector<32x32xbf16>
    %cst_16 = arith.constant dense<0.000000e+00> : vector<8x32xf32>
    %21 = tpu.matmul %6, %20, %cst_16 {dimension_numbers = #tpu.dot_dimension_numbers<[1], [0], [0], [1], [0, 0, 1, 1], [], []>} : vector<8x32xbf16>, vector<32x32xbf16>, vector<8x32xf32> -> vector<8x32xf32>
    %22 = vector.extract_strided_slice %4 {offsets = [2, 0], sizes = [1, 32], strides = [1, 1]} : vector<10x32xf32> to vector<1x32xf32>
    %23 = vector.broadcast %22 : vector<1x32xf32> to vector<8x32xf32>
    %24 = arith.addf %21, %23 : vector<8x32xf32>
    %cst_17 = arith.constant 0.176776692 : f32
    %25 = vector.broadcast %cst_17 : f32 to vector<8x32xf32>
    %26 = arith.mulf %12, %25 : vector<8x32xf32>
    %27 = arith.truncf %26 : vector<8x32xf32> to vector<8x32xbf16>
    %28 = arith.truncf %18 : vector<8x32xf32> to vector<8x32xbf16>
    %cst_18 = arith.constant dense<0.000000e+00> : vector<8x8xf32>
    %29 = tpu.matmul %27, %28, %cst_18 {dimension_numbers = #tpu.dot_dimension_numbers<[1], [1], [0], [0], [0, 0, 1, 0], [], []>} : vector<8x32xbf16>, vector<8x32xbf16>, vector<8x8xf32> -> vector<8x8xf32>
    %cst_19 = arith.constant dense<0xFF800000> : vector<8xf32>
    %30 = vector.multi_reduction <maximumf>, %29, %cst_19 [1] : vector<8x8xf32> to vector<8xf32>
    %31 = vector.shape_cast %30 : vector<8xf32> to vector<8x1xf32>
    %32 = vector.broadcast %31 : vector<8x1xf32> to vector<8x8xf32>
    %33 = arith.subf %29, %32 : vector<8x8xf32>
    %34 = math.exp %33 : vector<8x8xf32>
    %cst_20 = arith.constant dense<0.000000e+00> : vector<8xf32>
    %35 = vector.multi_reduction <add>, %34, %cst_20 [1] : vector<8x8xf32> to vector<8xf32>
    %36 = vector.shape_cast %35 : vector<8xf32> to vector<8x1xf32>
    %37 = vector.broadcast %36 : vector<8x1xf32> to vector<8x8xf32>
    %38 = arith.divf %34, %37 : vector<8x8xf32>
    %39 = arith.truncf %38 : vector<8x8xf32> to vector<8x8xbf16>
    %40 = arith.truncf %24 : vector<8x32xf32> to vector<8x32xbf16>
    %cst_21 = arith.constant dense<0.000000e+00> : vector<8x32xf32>
    %41 = tpu.matmul %39, %40, %cst_21 {dimension_numbers = #tpu.dot_dimension_numbers<[1], [0], [0], [1], [0, 0, 1, 1], [], []>} : vector<8x8xbf16>, vector<8x32xbf16>, vector<8x32xf32> -> vector<8x32xf32>
    %42 = arith.truncf %41 : vector<8x32xf32> to vector<8x32xbf16>
    %c0_22 = arith.constant 0 : index
    %c3 = arith.constant 3 : index
    %c0_23 = arith.constant 0 : index
    %c0_24 = arith.constant 0 : index
    %43 = vector.load %arg5[%c0_22, %c3, %c0_23, %c0_24] : memref<1x6x32x32xbf16, #tpu.memory_space<vmem>>, vector<1x1x32x32xbf16>
    %44 = vector.shape_cast %43 : vector<1x1x32x32xbf16> to vector<32x32xbf16>
    %cst_25 = arith.constant dense<0.000000e+00> : vector<8x32xf32>
    %45 = tpu.matmul %42, %44, %cst_25 {dimension_numbers = #tpu.dot_dimension_numbers<[1], [0], [0], [1], [0, 0, 1, 1], [], []>} : vector<8x32xbf16>, vector<32x32xbf16>, vector<8x32xf32> -> vector<8x32xf32>
    %46 = vector.extract_strided_slice %4 {offsets = [3, 0], sizes = [1, 32], strides = [1, 1]} : vector<10x32xf32> to vector<1x32xf32>
    %47 = vector.broadcast %46 : vector<1x32xf32> to vector<8x32xf32>
    %48 = arith.addf %45, %47 : vector<8x32xf32>
    %49 = arith.addf %5, %48 : vector<8x32xf32>
    %cst_26 = arith.constant dense<0.000000e+00> : vector<8xf32>
    %50 = vector.multi_reduction <add>, %49, %cst_26 [1] : vector<8x32xf32> to vector<8xf32>
    %51 = vector.shape_cast %50 : vector<8xf32> to vector<8x1xf32>
    %cst_27 = arith.constant 3.200000e+01 : f32
    %52 = vector.broadcast %cst_27 : f32 to vector<8x1xf32>
    %53 = arith.divf %51, %52 : vector<8x1xf32>
    %54 = vector.broadcast %53 : vector<8x1xf32> to vector<8x32xf32>
    %55 = arith.subf %49, %54 : vector<8x32xf32>
    %56 = arith.mulf %55, %55 : vector<8x32xf32>
    %cst_28 = arith.constant dense<0.000000e+00> : vector<8xf32>
    %57 = vector.multi_reduction <add>, %56, %cst_28 [1] : vector<8x32xf32> to vector<8xf32>
    %58 = vector.shape_cast %57 : vector<8xf32> to vector<8x1xf32>
    %cst_29 = arith.constant 3.200000e+01 : f32
    %59 = vector.broadcast %cst_29 : f32 to vector<8x1xf32>
    %60 = arith.divf %58, %59 : vector<8x1xf32>
    %61 = vector.broadcast %53 : vector<8x1xf32> to vector<8x32xf32>
    %62 = arith.subf %49, %61 : vector<8x32xf32>
    %cst_30 = arith.constant 9.99999974E-6 : f32
    %63 = vector.broadcast %cst_30 : f32 to vector<8x1xf32>
    %64 = arith.addf %60, %63 : vector<8x1xf32>
    %65 = math.rsqrt %64 : vector<8x1xf32>
    %66 = vector.broadcast %65 : vector<8x1xf32> to vector<8x32xf32>
    %67 = arith.mulf %62, %66 : vector<8x32xf32>
    %68 = vector.extract_strided_slice %4 {offsets = [4, 0], sizes = [1, 32], strides = [1, 1]} : vector<10x32xf32> to vector<1x32xf32>
    %69 = vector.broadcast %68 : vector<1x32xf32> to vector<8x32xf32>
    %70 = arith.mulf %67, %69 : vector<8x32xf32>
    %71 = vector.extract_strided_slice %4 {offsets = [5, 0], sizes = [1, 32], strides = [1, 1]} : vector<10x32xf32> to vector<1x32xf32>
    %72 = vector.broadcast %71 : vector<1x32xf32> to vector<8x32xf32>
    %73 = arith.addf %70, %72 : vector<8x32xf32>
    %74 = arith.truncf %73 : vector<8x32xf32> to vector<8x32xbf16>
    %c0_31 = arith.constant 0 : index
    %c4 = arith.constant 4 : index
    %c0_32 = arith.constant 0 : index
    %c0_33 = arith.constant 0 : index
    %75 = vector.load %arg5[%c0_31, %c4, %c0_32, %c0_33] : memref<1x6x32x32xbf16, #tpu.memory_space<vmem>>, vector<1x1x32x32xbf16>
    %76 = vector.shape_cast %75 : vector<1x1x32x32xbf16> to vector<32x32xbf16>
    %cst_34 = arith.constant dense<0.000000e+00> : vector<8x32xf32>
    %77 = tpu.matmul %74, %76, %cst_34 {dimension_numbers = #tpu.dot_dimension_numbers<[1], [0], [0], [1], [0, 0, 1, 1], [], []>} : vector<8x32xbf16>, vector<32x32xbf16>, vector<8x32xf32> -> vector<8x32xf32>
    %78 = vector.extract_strided_slice %4 {offsets = [6, 0], sizes = [1, 32], strides = [1, 1]} : vector<10x32xf32> to vector<1x32xf32>
    %79 = vector.broadcast %78 : vector<1x32xf32> to vector<8x32xf32>
    %80 = arith.addf %77, %79 : vector<8x32xf32>
    %cst_35 = arith.constant 0.000000e+00 : f32
    %81 = vector.broadcast %cst_35 : f32 to vector<8x32xf32>
    %82 = arith.maximumf %80, %81 : vector<8x32xf32>
    %83 = arith.truncf %82 : vector<8x32xf32> to vector<8x32xbf16>
    %c0_36 = arith.constant 0 : index
    %c5 = arith.constant 5 : index
    %c0_37 = arith.constant 0 : index
    %c0_38 = arith.constant 0 : index
    %84 = vector.load %arg5[%c0_36, %c5, %c0_37, %c0_38] : memref<1x6x32x32xbf16, #tpu.memory_space<vmem>>, vector<1x1x32x32xbf16>
    %85 = vector.shape_cast %84 : vector<1x1x32x32xbf16> to vector<32x32xbf16>
    %cst_39 = arith.constant dense<0.000000e+00> : vector<8x32xf32>
    %86 = tpu.matmul %83, %85, %cst_39 {dimension_numbers = #tpu.dot_dimension_numbers<[1], [0], [0], [1], [0, 0, 1, 1], [], []>} : vector<8x32xbf16>, vector<32x32xbf16>, vector<8x32xf32> -> vector<8x32xf32>
    %87 = vector.extract_strided_slice %4 {offsets = [7, 0], sizes = [1, 32], strides = [1, 1]} : vector<10x32xf32> to vector<1x32xf32>
    %88 = vector.broadcast %87 : vector<1x32xf32> to vector<8x32xf32>
    %89 = arith.addf %86, %88 : vector<8x32xf32>
    %90 = arith.addf %73, %89 : vector<8x32xf32>
    %cst_40 = arith.constant dense<0.000000e+00> : vector<8xf32>
    %91 = vector.multi_reduction <add>, %90, %cst_40 [1] : vector<8x32xf32> to vector<8xf32>
    %92 = vector.shape_cast %91 : vector<8xf32> to vector<8x1xf32>
    %cst_41 = arith.constant 3.200000e+01 : f32
    %93 = vector.broadcast %cst_41 : f32 to vector<8x1xf32>
    %94 = arith.divf %92, %93 : vector<8x1xf32>
    %95 = vector.broadcast %94 : vector<8x1xf32> to vector<8x32xf32>
    %96 = arith.subf %90, %95 : vector<8x32xf32>
    %97 = arith.mulf %96, %96 : vector<8x32xf32>
    %cst_42 = arith.constant dense<0.000000e+00> : vector<8xf32>
    %98 = vector.multi_reduction <add>, %97, %cst_42 [1] : vector<8x32xf32> to vector<8xf32>
    %99 = vector.shape_cast %98 : vector<8xf32> to vector<8x1xf32>
    %cst_43 = arith.constant 3.200000e+01 : f32
    %100 = vector.broadcast %cst_43 : f32 to vector<8x1xf32>
    %101 = arith.divf %99, %100 : vector<8x1xf32>
    %102 = vector.broadcast %94 : vector<8x1xf32> to vector<8x32xf32>
    %103 = arith.subf %90, %102 : vector<8x32xf32>
    %cst_44 = arith.constant 9.99999974E-6 : f32
    %104 = vector.broadcast %cst_44 : f32 to vector<8x1xf32>
    %105 = arith.addf %101, %104 : vector<8x1xf32>
    %106 = math.rsqrt %105 : vector<8x1xf32>
    %107 = vector.broadcast %106 : vector<8x1xf32> to vector<8x32xf32>
    %108 = arith.mulf %103, %107 : vector<8x32xf32>
    %109 = vector.extract_strided_slice %4 {offsets = [8, 0], sizes = [1, 32], strides = [1, 1]} : vector<10x32xf32> to vector<1x32xf32>
    %110 = vector.broadcast %109 : vector<1x32xf32> to vector<8x32xf32>
    %111 = arith.mulf %108, %110 : vector<8x32xf32>
    %112 = vector.extract_strided_slice %4 {offsets = [9, 0], sizes = [1, 32], strides = [1, 1]} : vector<10x32xf32> to vector<1x32xf32>
    %113 = vector.broadcast %112 : vector<1x32xf32> to vector<8x32xf32>
    %114 = arith.addf %111, %113 : vector<8x32xf32>
    %c0_45 = arith.constant 0 : index
    %c0_46 = arith.constant 0 : index
    %115 = vector.load %arg8[%c0_45, %c0_46] : memref<8x32xf32, #tpu.memory_space<vmem>>, vector<8x32xf32>
    tpu.vector_store %arg8[%c0_45, %c0_46], %114 {strides = array<i32>} : memref<8x32xf32, #tpu.memory_space<vmem>>, vector<8x32xf32>,
    %c1_i32 = arith.constant 1 : i32
    %116 = arith.cmpi eq, %arg1, %c1_i32 : i32
    %117 = arith.extui %116 : i1 to i32
    %c0_i32_47 = arith.constant 0 : i32
    %118 = arith.cmpi ne, %117, %c0_i32_47 : i32
    scf.if %118 {
      %c0_48 = arith.constant 0 : index
      %c0_49 = arith.constant 0 : index
      %c0_50 = arith.constant 0 : index
      %119 = vector.load %arg7[%c0_48, %c0_49, %c0_50] : memref<1x8x32xf32, #tpu.memory_space<vmem>>, vector<1x8x32xf32>
      %120 = vector.shape_cast %119 : vector<1x8x32xf32> to vector<8x32xf32>
      %121 = vector.shape_cast %114 : vector<8x32xf32> to vector<1x8x32xf32>
      tpu.vector_store %arg7[%c0_48, %c0_49, %c0_50], %121 {strides = array<i32>} : memref<1x8x32xf32, #tpu.memory_space<vmem>>, vector<1x8x32xf32>,
    } else {
    }
    return
  }
  func.func @transform_0(%arg0: i32, %arg1: i32) -> (i32, i32, i32) {
    %c0_i32 = arith.constant 0 : i32
    %c0_i32_0 = arith.constant 0 : i32
    %c0_i32_1 = arith.constant 0 : i32
    return %arg0, %c0_i32, %c0_i32_0 : i32, i32, i32
  }
  func.func @transform_1(%arg0: i32, %arg1: i32) -> (i32, i32) {
    %c0_i32 = arith.constant 0 : i32
    %c0_i32_0 = arith.constant 0 : i32
    %c0_i32_1 = arith.constant 0 : i32
    return %c0_i32, %c0_i32_0 : i32, i32
  }
  func.func @transform_2(%arg0: i32, %arg1: i32) -> (i32, i32) {
    %c0_i32 = arith.constant 0 : i32
    %c0_i32_0 = arith.constant 0 : i32
    %c0_i32_1 = arith.constant 0 : i32
    return %c0_i32, %c0_i32_0 : i32, i32
  }
  func.func @transform_3(%arg0: i32, %arg1: i32) -> (i32, i32, i32, i32) {
    %c0_i32 = arith.constant 0 : i32
    %c0_i32_0 = arith.constant 0 : i32
    %c0_i32_1 = arith.constant 0 : i32
    %c0_i32_2 = arith.constant 0 : i32
    return %arg1, %c0_i32, %c0_i32_0, %c0_i32_1 : i32, i32, i32, i32
  }
  func.func @transform_4(%arg0: i32, %arg1: i32) -> (i32, i32, i32) {
    %c0_i32 = arith.constant 0 : i32
    %c0_i32_0 = arith.constant 0 : i32
    %c0_i32_1 = arith.constant 0 : i32
    return %arg1, %c0_i32, %c0_i32_0 : i32, i32, i32
  }
  func.func @transform_5(%arg0: i32, %arg1: i32) -> (i32, i32, i32) {
    %c0_i32 = arith.constant 0 : i32
    %c0_i32_0 = arith.constant 0 : i32
    %c0_i32_1 = arith.constant 0 : i32
    return %arg0, %c0_i32, %c0_i32_0 : i32, i32, i32
  }
}

</mosaic_0001>

<bundles_post_ra>
// kernel: trans_encoder_forward.1
= control target key start
LH: loop header
LB: loop body
LE: loop exit
PB: predicated region body
PF: predicated region fallthrough
CT: control target
= control target key end

     0   :  { %10 = vsyncpa [#allocation4], 0  ;;  %s1645_s0 = inlined_call_operand.vmem [shape: f32[2,8,8], index: 0, kind: input, shape index: {}]   ;;  %s1646_s1 = inlined_call_operand.vmem [shape: bf16[8,32], index: 1, kind: input, shape index: {}]   ;;  %s1647_s2 = inlined_call_operand.vmem [shape: f32[1,32], index: 2, kind: input, shape index: {}]   ;;  %s1648_s3 = inlined_call_operand.hbm [shape: bf16[2,6,32,32], index: 3, kind: input, shape index: {}]   ;;  %s1649_s4 = inlined_call_operand.vmem [shape: f32[2,10,32], index: 4, kind: input, shape index: {}]   ;;  %s1650_s5 = inlined_call_operand.vmem [shape: f32[2,8,32], index: 5, kind: output, shape index: {}]  }
   0x1   :  { %12 = vsyncpa [#allocation4 + $0x1], 0  ;;  %s1390_s18 = smov 0   ;;  %s1392_s19 = smov 0  }
   0x2   :  { %s1394_s20 = smov 0   ;;  %s1396_s21 = smov 0  }
   0x3   :  { %s1398_s22 = smov 0   ;;  %s1400_s23 = smov 0  }
   0x4   :  { %s1402_s24 = smov 0   ;;  %s1404_s25 = smov 0  }
   0x5 LB: > { %s1008_s26 = sadd.s32 4294967295, %s1351_s25   ;;  %s27_s27 = sadd.s32 1, %s1343_s23  ;;  %s1351_s25 = sphi %s1404_s25, %s18_s25   ;;  %s1347_s24 = sphi %s1402_s24, %s1659_s24   ;;  %s1343_s23 = sphi %s1400_s23, %s1658_s23   ;;  %s1339_s22 = sphi %s1398_s22, %s1657_s22   ;;  %s1335_s21 = sphi %s1396_s21, %s1656_s21   ;;  %s1331_s20 = sphi %s1394_s20, %s1655_s20   ;;  %s1327_s19 = sphi %s1392_s19, %s1654_s19   ;;  %s1323_s18 = sphi %s1390_s18, %s1653_s18  }
   0x6   : > { %p28_p0 = scmp.ge.s32.totalorder %s27_s27, 2  ;;  %s30_s28 = sadd.s32 1, %s1347_s24 }
   0x7   : > { %s105_s29 = sadd.s32 1, %s1331_s20  ;;  %p112_p1 = scmp.ne.s32.totalorder %s1331_s20, %s1327_s19 }
   0x8   : > { %s1661_s27 = smov (%p28_p0, %s27_s27), 0  ;;  %s1663_s28 = smov (!%p28_p0, %s30_s28), %s1347_s24 }
   0x9   : > { %s102_s30 = ssub.s32 %s1343_s23, %s1661_s27  ;;  %p113_p2 = scmp.eq.s32.totalorder %s1351_s25, 0 }
   0xa   : > { %p32_p3 = scmp.ge.s32.totalorder %s1663_s28, 2  ;;  %p103_p4 = scmp.eq.s32.totalorder %s102_s30, 0 }
   0xb   : > { %p114_p5 = por %p113_p2, %p112_p1  ;;  %p118_p6 = scmp.ne.s32.totalorder %s1327_s19, %s1323_s18 }
   0xc   : > { %s1665_s28 = smov (%p32_p3, %s1663_s28), 0  ;;  %p119_p7 = scmp.eq.s32.totalorder %s1008_s26, 0 }
   0xd   : > { %s1444_s6 = scalar_select %p103_p4, %s1331_s20, %s105_s29  }
   0xe   : > { %p1164_p8 = scmp.lt.s32.totalorder %s1351_s25, 4  ;;  %s207_s7 = sand.u32 1, %s1331_s20  }
   0xf   : > { %p1448_p9 = por %p119_p7, %p118_p6  ;;  %s1155_s9 = smul.u32 96, %s207_s7 }
  0x10   : > { %p1452_p10 = pnand %p1164_p8, %p114_p5  ;;  %s1156_s11 = smul.u32 1536, %s1343_s23 }
  0x11   : > { %s211_s15 = scalar_lea.vmem [#allocation3], %s1155_s9  ;;  %s1464_s17 = scalar_lea.sflag [#allocation4], %s207_s7 }
  0x12   : > { %s1460_s14 = scalar_lea.hbm %s1648_s3, %s1156_s11  ;;  %s218_s16 = sshll.u32 %s211_s15, 4  ;;  %s1462_s16 = int_to_ptr.vmem [resolvable:$true] %s218_s16 }
  0x13   : > { %s1255_s18 = scalar_lea.hbm %s1460_s14, 1536  ;;  %p1257_p12 = pneg %p1452_p10 }
  0x14   : > { %p1256_p11 = scmp.ne.s32.totalorder %s1460_s14, %s1255_s18  ;;  %s1260_s30 = scalar_lea.hbm %s1648_s3, 3072 }
  0x15   : > { %p1261_p1 = scmp.lt.u32.totalorder %s1460_s14, %s1648_s3  ;;  %p1262_p2 = scmp.lt.u32.totalorder %s1260_s30, %s1255_s18 }
  0x16   : > { %p1258_p13 = pnand %p1257_p12, %p1256_p11  ;;  %p1264_p4 = scmp.lt.u32.totalorder %s1255_s18, %s1460_s14 }
  0x17   : > { %p1263_p3 = por %p1262_p2, %p1261_p1 }
  0x18   : > { %p1259_p0 = pneg %p1258_p13 }
  0x19   : > { %p1265_p5 = por %p1264_p4, %p1263_p3 }
  0x1b   : > { %p1266_p6 = pnand %p1265_p5, %p1259_p0 }
  0x1d   : > { %1269 = shalt.err (!%p1266_p6)
}
  0x1e   : > { %s1270_s7 = scalar_lea.vmem %s1462_s16, 1536  ;;  %s1353_s9 = smov [#allocation3]  }
  0x1f   : > { %p1271_p7 = scmp.ne.s32.totalorder %s1462_s16, %s1270_s7  ;;  %s1275_s13 = sshll.u32 %s1353_s9, 4  ;;  %s1276_s13 = int_to_ptr.vmem [resolvable:$false] %s1275_s13 }
  0x20   : > { %s1277_s15 = scalar_lea.vmem %s1276_s13, 3072  ;;  %p1278_p13 = scmp.lt.s32.totalorder %s1462_s16, %s1276_s13 }
  0x21   : > { %p1273_p8 = pnand %p1271_p7, %p1257_p12  ;;  %p1279_p1 = scmp.lt.s32.totalorder %s1277_s15, %s1270_s7 }
  0x23   : > { %p1274_p11 = pneg %p1273_p8  ;;  %p1280_p2 = por %p1279_p1, %p1278_p13 }
  0x25   : > { %p1281_p3 = pnand %p1280_p2, %p1274_p11 }
  0x27   : > { %1284 = shalt.err (!%p1281_p3)
}
  0x28   : > { %s1354_s18 = smov 64   ;;  %s1355_s26 = smov 4  }
  0x29   : > { %1163 = dma.hbm_to_vmem [thread:$0]  (!%p1452_p10), %s1460_s14, 1536, %s1462_s16, %s1464_s17, %s1354_s18, %s1354_s18, %s1355_s26  }
  0x2a   : > { %p1013_p12 = scmp.ge.s32.totalorder %s1351_s25, 1  ;;  %p234_p0 = scmp.lt.s32.totalorder %s1351_s25, 5 }
  0x2c   : > { %p235_p4 = pnand %p1013_p12, %p234_p0 }
  0x2d   : > { %s240_s29 = sand.u32 (!%p235_p4), 1, %s1327_s19  }
  0x2e   : > { %238 = sbr.rel (%p235_p4) target bundleno = 2532 (0x9e4), region = 40  ;;  %s241_s11 = scalar_lea.sflag (!%p235_p4), [#allocation4], %s240_s29 }
  0x2f   : > { %s1157_s30 = smul.u32 (!%p235_p4), 96, %s240_s29 }
  0x31   : > { %s1495_s12 = scalar_lea.vmem (!%p235_p4), [#allocation3], %s1157_s30 }
  0x35   : > { %1318 = dma.done.wait (%p1448_p9), %s241_s11, 1536  }
  0x36   : > { %1320 = vsyncadd (%p1448_p9), %s241_s11, 4294965760  ;;  %p279_p10 = scmp.lt.s32.totalorder %s1339_s22, 1  ;;  %p283_p5 = scmp.lt.s32.totalorder %s1335_s21, 1 }
  0x37   : > { %p1018_p9 = scmp.ne.s32.totalorder %s1335_s21, 0 }
  0x38   : > { %s1667_s22 = smov (!%p279_p10, %s1339_s22), 1  ;;  %v299_v0 = vld [vmem:[%s1646_s1] sm:$0xf] (!%p1018_p9)  ;;  %vm311_vm0 = vcmask (!%p1018_p9), 1043456   ;;  %v1356_v2 = vmov (!%p1018_p9), 0.0   ;;  %vm1357_vm1 = vmmov (!%p1018_p9), 0  }
  0x39   : > { %s284_s10 = scalar_select %p283_p5, %s1335_s21, 1 }
  0x3a   : > { %s1014_s14 = sshll.u32 %s1667_s22, 3  ;;  %296 = sbr.rel (%p1018_p9) target bundleno = 278 (0x116), region = 48  ;;  %1089 = vmatprep.subr.bf16.mxu0 (!%p1018_p9), %v1356_v2  ;;  %v313_v3 = vsel (!%p1018_p9), %vm311_vm0, %v299_v0, 0  ;;  %1091 = vmatprep.mubr.msk.bf16.mxu0 (!%p1018_p9), %vm1357_vm1, %v1356_v2  ;;  %vm307_vm2 = vcmask (!%p1018_p9), 64512   ;;  %v1019_v5 = vld [vmem:[%s1647_s2] ss:$0 sm:$0xff] (!%p1018_p9) }
  0x3b   : > { %s282_s7 = scalar_lea.vmem %s1645_s0, %s1014_s14  ;;  %s1064_s9 = sshll.u32 %s284_s10, 4  ;;  %1090 = vmatpush3.bf16.msra.mxu0 (!%p1018_p9), %v313_v3  ;;  %vm355_vm3 = vcmask (!%p1018_p9), 261120  }
  0x3c   : > { %s1511_s18 = scalar_lea.vmem %s1649_s4, %s1064_s9  ;;  %s1516_s29 = scalar_lea.vmem %s1650_s5, %s1014_s14  ;;  %v297_v1 = vld [vmem:[%s282_s7] sm:$0xff] (!%p1018_p9) }
  0x3d   : > { %v298_v4 = vpack.c.bf16 (!%p1018_p9), %v297_v1, %v297_v1 }
  0x3f   : > { %1092 = vmatmul.mubr.msk.bf16.vlgmr.msra.gmra.mrb[0].mxu0 (!%p1018_p9), %vm307_vm2, %v298_v4 }
 0x112   : > { %v349_v6 = vpop.f32.mrb[0].mxu0 }
 0x113   : > { %v350_v7 = vadd.f32 %v1019_v5, %v349_v6  ;;  %v1093_v8 = vpop.f32.mrb[1].mxu0 }
 0x114   : > { %v352_v9 = vpop.f32.mrb[2].mxu0 }
 0x115   : > { %356 = vst.msk [vmem:[#allocation2] sm:$0xff] %vm355_vm3, %v350_v7  ;;  %v1094_v10 = vpop.f32.mrb[3].mxu0 }
 0x116 PF: > { %v1235_v11 = vld [vmem:[%s1495_s12 + $0x10] sm:$0xff]   ;;  %v1358_v12 = vmov 0.0   ;;  %v1236_v13 = vld [vmem:[%s1495_s12] sm:$0xff]   ;;  %v1237_v14 = vld [vmem:[%s1495_s12 + $0x18] sm:$0xff]   ;;  %vm1359_vm4 = vmmov 0   ;;  %vm381_vm5 = vcmask 261120   ;;  %v365_v18 = vlaneseq }
 0x117   : > { %1103 = vmatprep.subr.bf16.mxu1 %v1358_v12  ;;  %1095 = vmatprep.subr.bf16.mxu0 %v1358_v12  ;;  %v1238_v16 = vld [vmem:[%s1495_s12 + $0x8] sm:$0xff]   ;;  %v1553_v21 = vld [vmem:[%s1511_s18] sm:$0xff]  ;;  %v1239_v39 = vld [vmem:[%s1495_s12 + $0x20] sm:$0xff]   ;;  %vm596_vm6 = vcmask 64512   ;;  %vm613_vm7 = vcmask 1043456   ;;  %p1061_p6 = scmp.ne.s32.totalorder %s1335_s21, 1 }
 0x118   : > { %1104 = vmatpush3.bf16.msra.mxu1 %v1235_v11  ;;  %1107 = vmatprep.mubr.msk.bf16.mxu1 %vm1359_vm4, %v1358_v12  ;;  %v1549_v19 = vshrl.u32 %v365_v18, 7  ;;  %v1240_v40 = vld [vmem:[%s1495_s12 + $0x28] sm:$0xff]   ;;  %v1241_v60 = vld [vmem:[%s1495_s12 + $0x30] sm:$0xff]   ;;  %v1242_v1 = vld [vmem:[%s1495_s12 + $0x38] sm:$0xff]  }
 0x119   : > { %1105 = vmatprep.subr.bf16.mxu1 %v1358_v12  ;;  %1096 = vmatpush3.bf16.msra.mxu0 %v1236_v13 }
 0x11a   : > { %1097 = vmatprep.subr.bf16.mxu0 %v1358_v12  ;;  %1099 = vmatprep.mubr.msk.bf16.mxu0 %vm1359_vm4, %v1358_v12  ;;  %v432_v20 = vsub.s32 1, %v1549_v19  ;;  %v367_v22 = vsub.s32 0, %v1549_v19  ;;  %v493_v46 = vsub.s32 2, %v1549_v19  ;;  %v665_v7 = vsub.s32 3, %v1549_v19 }
 0x11c   : > { %v1533_v15 = vld [vmem:[#allocation2] sm:$0xff]  ;;  %1106 = vmatpush3.bf16.msra.mxu1 %v1237_v14  ;;  %v433_v23 = vrot.slane %v1553_v21, %v432_v20  ;;  %v368_v24 = vrot.slane %v1553_v21, %v367_v22  ;;  %v494_v47 = vrot.slane %v1553_v21, %v493_v46  ;;  %v666_v8 = vrot.slane %v1553_v21, %v665_v7 }
 0x11d   : > { %v360_v17 = vpack.c.bf16 %v1533_v15, %v1533_v15  ;;  %1098 = vmatpush3.bf16.msra.mxu0 %v1238_v16  ;;  %1119 = vmatprep.subr.bf16.mxu1 %v1358_v12 }
 0x11e   : > { %1111 = vmatprep.subr.bf16.mxu0 %v1358_v12 }
 0x11f   : > { %1108 = vmatmul.mubr.msk.bf16.vlgmr.msra.gmra.mrb[0].mxu1 %vm381_vm5, %v360_v17 }
 0x120   : > { %1100 = vmatmul.mubr.msk.bf16.vlgmr.msra.gmra.mrb[0].mxu0 %vm381_vm5, %v360_v17  ;;  %1121 = vmatprep.mubr.msk.bf16.mxu1 %vm1359_vm4, %v1358_v12 }
 0x121   : > { %1115 = vmatprep.mubr.msk.bf16.mxu0 %vm1359_vm4, %v1358_v12  ;;  %1112 = vmatpush3.bf16.msra.mxu0 %v1239_v39 }
 0x122   : > { %1113 = vmatprep.subr.bf16.mxu0 %v1358_v12 }
 0x125   : > { %1114 = vmatpush3.bf16.msra.mxu0 %v1240_v40  ;;  %v1245_v40 = vld [vmem:[%s1495_s12 + $0x50] sm:$0xff]  }
 0x126   : > { %1125 = vmatprep.subr.bf16.mxu0 %v1358_v12 }
 0x128   : > { %1116 = vmatmul.mubr.msk.bf16.vlgmr.msra.gmra.mrb[4].mxu0 %vm381_vm5, %v360_v17 }
 0x129   : > { %1127 = vmatprep.mubr.msk.bf16.mxu0 %vm1359_vm4, %v1358_v12 }
 0x1f2   : > { %v480_v25 = vpop.f32.mrb[0].mxu1 }
 0x1f3   : > { %v481_v26 = vadd.f32 %v480_v25, %v433_v23  ;;  %v1109_v27 = vpop.f32.mrb[1].mxu1  ;;  %v419_v28 = vpop.f32.mrb[0].mxu0 }
 0x1f4   : > { %v483_v29 = vpop.f32.mrb[2].mxu1  ;;  %v420_v30 = vadd.f32 %v419_v28, %v368_v24  ;;  %v1101_v31 = vpop.f32.mrb[1].mxu0  ;;  %v1243_v27 = vld [vmem:[%s1495_s12 + $0x40] sm:$0xff]   ;;  %v1244_v28 = vld [vmem:[%s1495_s12 + $0x48] sm:$0xff]  }
 0x1f5   : > { %v549_v32 = vpack.c.bf16 %v481_v26, %v481_v26  ;;  %v1110_v33 = vpop.f32.mrb[3].mxu1  ;;  %v422_v34 = vpop.f32.mrb[2].mxu0  ;;  %v739_v31 = vsub.s32 4, %v1549_v19 }
 0x1f6   : > { %v1102_v35 = vpop.f32.mrb[3].mxu0  ;;  %v547_v37 = vmul.f32 0.17677669, %v420_v30 }
 0x1f7   : > { %v554_v36 = vsel %vm381_vm5, %v549_v32, 0  ;;  %v744_v32 = vsub.s32 5, %v1549_v19  ;;  %v740_v33 = vrot.slane %v1553_v21, %v739_v31 }
 0x1f8   : > { %1120 = vmatpush3.bf16.xpose.msra.mxu1 %v554_v36  ;;  %v548_v38 = vpack.c.bf16 %v547_v37, %v547_v37 }
 0x1f9   : > { %1131 = vmatprep.subr.bf16.mxu1 %v1358_v12  ;;  %v745_v36 = vrot.slane %v1553_v21, %v744_v32 }
 0x1fb   : > { %v541_v48 = vpop.f32.mrb[4].mxu0 }
 0x1fc   : > { %v542_v49 = vadd.f32 %v541_v48, %v494_v47  ;;  %v1117_v50 = vpop.f32.mrb[5].mxu0 }
 0x1fd   : > { %v544_v51 = vpop.f32.mrb[6].mxu0 }
 0x1fe   : > { %v609_v52 = vpack.c.bf16 %v542_v49, %v542_v49  ;;  %v1118_v53 = vpop.f32.mrb[7].mxu0  ;;  %v821_v51 = vsub.s32 7, %v1549_v19 }
 0x1ff   : > { %1122 = vmatmul.mubr.msk.bf16.vlgmr.msra.gmra.mrb[4].mxu1 %vm381_vm5, %v548_v38 }
 0x200   : > { %1135 = vmatprep.mubr.msk.bf16.mxu1 %vm1359_vm4, %v1358_v12  ;;  %v615_v54 = vsel %vm613_vm7, %v609_v52, 0  ;;  %1132 = vmatpush3.bf16.msra.mxu1 %v1241_v60  ;;  %v822_v52 = vrot.slane %v1553_v21, %v821_v51 }
 0x201   : > { %1126 = vmatpush3.bf16.msra.mxu0 %v615_v54  ;;  %1133 = vmatprep.subr.bf16.mxu1 %v1358_v12 }
 0x202   : > { %1139 = vmatprep.subr.bf16.mxu0 %v1358_v12 }
 0x204   : > { %1134 = vmatpush3.bf16.msra.mxu1 %v1242_v1 }
 0x205   : > { %1147 = vmatprep.subr.bf16.mxu1 %v1358_v12 }
 0x2d2   : > { %v590_v41 = vpop.f32.mrb[4].mxu1 }
 0x2d3   : > { %v1123_v42 = vpop.f32.mrb[5].mxu1  ;;  %v597_v43 = vsel %vm596_vm6, %v590_v41, -inf }
 0x2d4   : > { %598 = vmax.xlane.f32.xlu0 %v597_v43  ;;  %v593_v44 = vpop.f32.mrb[6].mxu1  ;;  %v755_v42 = vsub.s32 6, %v1549_v19 }
 0x2d5   : > { %v1124_v45 = vpop.f32.mrb[7].mxu1 }
 0x2d6   : > { %v756_v43 = vrot.slane %v1553_v21, %v755_v42 }
 0x361   : > { %v599_v55 = vpop.xlane.xlu0 %598 }
 0x362   : > { %v600_v56 = vsub.f32 %v590_v41, %v599_v55  ;;  %v1246_v41 = vld [vmem:[%s1495_s12 + $0x58] sm:$0xff]  }
 0x364   : > { %v601_v57 = vmul.f32 1.442695, %v600_v56 }
 0x366   : > { %1247 = vpow2.f32 %v601_v57 }
 0x370   : > { %v1248_v58 = vpop.eup %1247 }
 0x371   : > { %v603_v59 = vsel %vm596_vm6, %v1248_v58, 0.0 }
 0x372   : > { %604 = vadd.xlane.f32.xlu0 %v603_v59 }
 0x3ff   : > { %v605_v61 = vpop.xlane.xlu0 %604 }
 0x400   : > { %1249 = vrcp.f32 %v605_v61 }
 0x40a   : > { %v1250_v62 = vpop.eup %1249 }
 0x40b   : > { %v607_v63 = vmul.f32 %v1250_v62, %v1248_v58 }
 0x40d   : > { %v608_v0 = vpack.c.bf16 %v607_v63, %v607_v63 }
 0x40f   : > { %1128 = vmatmul.mubr.msk.bf16.vlgmr.msra.gmra.mrb[8].mxu0 %vm596_vm6, %v608_v0 }
 0x410   : > { %1143 = vmatprep.mubr.msk.bf16.mxu0 %vm1359_vm4, %v1358_v12  ;;  %1140 = vmatpush3.bf16.msra.mxu0 %v1243_v27 }
 0x411   : > { %1141 = vmatprep.subr.bf16.mxu0 %v1358_v12 }
 0x414   : > { %1142 = vmatpush3.bf16.msra.mxu0 %v1244_v28 }
 0x4e2   : > { %v651_v2 = vpop.f32.mrb[8].mxu0 }
 0x4e3   : > { %v657_v3 = vpack.c.bf16 %v651_v2, %v651_v2  ;;  %v1129_v4 = vpop.f32.mrb[9].mxu0  ;;  %v358_v2 = vld [vmem:[%s1511_s18 + $0x8] sm:$0x3] }
 0x4e4   : > { %v654_v5 = vpop.f32.mrb[10].mxu0 }
 0x4e5   : > { %v1130_v6 = vpop.f32.mrb[11].mxu0  ;;  %1136 = vmatmul.mubr.msk.bf16.vlgmr.msra.gmra.mrb[8].mxu1 %vm381_vm5, %v657_v3  ;;  %v895_v3 = vrot.slane %v358_v2, %v367_v22  ;;  %v900_v5 = vrot.slane %v358_v2, %v432_v20 }
 0x4e6   : > { %1151 = vmatprep.mubr.msk.bf16.mxu1 %vm1359_vm4, %v1358_v12  ;;  %1148 = vmatpush3.bf16.msra.mxu1 %v1245_v40 }
 0x4e7   : > { %1149 = vmatprep.subr.bf16.mxu1 %v1358_v12 }
 0x4ea   : > { %1150 = vmatpush3.bf16.msra.mxu1 %v1246_v41 }
 0x5b8   : > { %v716_v9 = vpop.f32.mrb[8].mxu1 }
 0x5b9   : > { %v717_v10 = vadd.f32 %v716_v9, %v666_v8  ;;  %v1137_v11 = vpop.f32.mrb[9].mxu1 }
 0x5ba   : > { %v719_v13 = vpop.f32.mrb[10].mxu1 }
 0x5bb   : > { %v1138_v14 = vpop.f32.mrb[11].mxu1  ;;  %v722_v16 = vadd.f32 %v717_v10, %v1533_v15 }
 0x5bd   : > { %v723_v17 = vsel %vm381_vm5, %v722_v16, 0.0 }
 0x5be   : > { %724 = vadd.xlane.f32.xlu1 %v723_v17 }
 0x64b   : > { %v725_v18 = vpop.xlane.xlu1 %724 }
 0x64c   : > { %v727_v23 = vmul.f32 0.03125, %v725_v18 }
 0x64e   : > { %v728_v24 = vsub.f32 %v722_v16, %v727_v23 }
 0x650   : > { %v729_v25 = vmul.f32 %v728_v24, %v728_v24 }
 0x652   : > { %v730_v26 = vsel %vm381_vm5, %v729_v25, 0.0 }
 0x653   : > { %731 = vadd.xlane.f32.xlu1 %v730_v26 }
 0x6e0   : > { %v732_v29 = vpop.xlane.xlu1 %731 }
 0x6e1   : > { %v733_v30 = vmul.f32 0.03125, %v732_v29 }
 0x6e3   : > { %v734_v15 = vadd.f32 1e-05, %v733_v30 }
 0x6e5   : > { %1251 = vrsqrt.f32 %v734_v15 }
 0x6ef   : > { %v1252_v34 = vpop.eup %1251 }
 0x6f0   : > { %v736_v35 = vmul.f32 %v1252_v34, %v728_v24 }
 0x6f2   : > { %v741_v37 = vmul.f32 %v740_v33, %v736_v35 }
 0x6f4   : > { %v746_v38 = vadd.f32 %v745_v36, %v741_v37 }
 0x6f6   : > { %v747_v39 = vpack.c.bf16 %v746_v38, %v746_v38 }
 0x6f8   : > { %1144 = vmatmul.mubr.msk.bf16.vlgmr.msra.gmra.mrb[12].mxu0 %vm381_vm5, %v747_v39 }
 0x7cb   : > { %v806_v44 = vpop.f32.mrb[12].mxu0 }
 0x7cc   : > { %v807_v45 = vadd.f32 %v806_v44, %v756_v43  ;;  %v1145_v46 = vpop.f32.mrb[13].mxu0 }
 0x7cd   : > { %v809_v47 = vpop.f32.mrb[14].mxu0 }
 0x7ce   : > { %v812_v48 = vmax.f32 %v807_v45, 0.0  ;;  %v1146_v49 = vpop.f32.mrb[15].mxu0 }
 0x7d0   : > { %v813_v50 = vpack.c.bf16 %v812_v48, %v812_v48 }
 0x7d2   : > { %1152 = vmatmul.mubr.msk.bf16.vlgmr.msra.gmra.mrb[12].mxu1 %vm381_vm5, %v813_v50 }
 0x8a5   : > { %v872_v12 = vpop.f32.mrb[12].mxu1 }
 0x8a6   : > { %v873_v53 = vadd.f32 %v872_v12, %v822_v52  ;;  %v1153_v54 = vpop.f32.mrb[13].mxu1 }
 0x8a7   : > { %v875_v55 = vpop.f32.mrb[14].mxu1 }
 0x8a8   : > { %v1154_v56 = vpop.f32.mrb[15].mxu1  ;;  %v878_v57 = vadd.f32 %v873_v53, %v746_v38 }
 0x8aa   : > { %v879_v58 = vsel %vm381_vm5, %v878_v57, 0.0 }
 0x8ab   : > { %880 = vadd.xlane.f32.xlu0 %v879_v58 }
 0x938   : > { %v881_v59 = vpop.xlane.xlu0 %880 }
 0x939   : > { %v882_v60 = vmul.f32 0.03125, %v881_v59 }
 0x93b   : > { %v883_v61 = vsub.f32 %v878_v57, %v882_v60 }
 0x93d   : > { %v884_v62 = vmul.f32 %v883_v61, %v883_v61 }
 0x93f   : > { %v885_v63 = vsel %vm381_vm5, %v884_v62, 0.0 }
 0x940   : > { %886 = vadd.xlane.f32.xlu1 %v885_v63 }
 0x9cd   : > { %v887_v0 = vpop.xlane.xlu1 %886 }
 0x9ce   : > { %v888_v1 = vmul.f32 0.03125, %v887_v0 }
 0x9d0   : > { %v889_v21 = vadd.f32 1e-05, %v888_v1 }
 0x9d2   : > { %1253 = vrsqrt.f32 %v889_v21 }
 0x9dc   : > { %v1254_v4 = vpop.eup %1253 }
 0x9dd   : > { %v891_v6 = vmul.f32 %v1254_v4, %v883_v61  ;;  %906 = sbr.rel (%p1061_p6) target bundleno = 2532 (0x9e4), region = 52 }
 0x9df   : > { %v896_v7 = vmul.f32 %v895_v3, %v891_v6 }
 0x9e1   : > { %v901_v8 = vadd.f32 %v900_v5, %v896_v7 }
 0x9e3   : > { %902 = vst.msk [vmem:[#allocation2] sm:$0xff] %vm381_vm5, %v901_v8  ;;  %907 = vst.msk [vmem:[%s1516_s29] sm:$0xff] (!%p1061_p6), %vm381_vm5, %v901_v8 }
 0x9e4 PF: > { %s18_s25 = sadd.s32 1, %s1351_s25   ;;  %s1653_s18 = smov %s1327_s19 }
 0x9e5   : > { %p15_p7 = scmp.ge.s32.totalorder %s18_s25, 6   ;;  %s1654_s19 = smov %s1331_s20 }
 0x9e6   : > { %s1655_s20 = smov %s1444_s6  ;;  %s1656_s21 = smov %s1343_s23 }
 0x9e7   : > { %s1657_s22 = smov %s1347_s24  ;;  %s1658_s23 = smov %s1661_s27 }
 0x9e8   : > { %s1659_s24 = smov %s1665_s28  ;;  %17 = sbr.rel (!%p15_p7) target bundleno = 5 (0x5), region = 99 }
 0x9ef   :  { %927 = vsyncpa [#allocation4], 1 }
 0x9f0   :  { %929 = vsyncpa [#allocation4 + $0x1], 1 }

</bundles_post_ra>
